<compile_context>
chip_gen: v7x
topology: tpu7x:2x2x1
jax: 0.10.0
libtpu: 0.0.40
codegen_flags: <defaults>
</compile_context>

<pallas_src>
import jax
import jax.numpy as jnp
from jax.experimental import pallas as pl
from jax.experimental.pallas import tpu as pltpu


def _mlp_kernel(x_ref,
                w1_ref, b1_ref,
                w2_ref, b2_ref,
                w3_ref, b3_ref,
                w4_ref, b4_ref,
                w5_ref, b5_ref,
                o_ref):
    # 5 MXU matmuls + f32 bias adds + ReLUs on one (tb, ...) batch tile.
    op_dtype = w1_ref.dtype  # bf16 (or f32) MXU operand dtype

    h = jnp.dot(x_ref[...], w1_ref[...],
                preferred_element_type=jnp.float32) + b1_ref[...]
    h = jnp.maximum(h, 0.0)

    h = jnp.dot(h.astype(op_dtype), w2_ref[...],
                preferred_element_type=jnp.float32) + b2_ref[...]
    h = jnp.maximum(h, 0.0)

    h = jnp.dot(h.astype(op_dtype), w3_ref[...],
                preferred_element_type=jnp.float32) + b3_ref[...]
    h = jnp.maximum(h, 0.0)

    h = jnp.dot(h.astype(op_dtype), w4_ref[...],
                preferred_element_type=jnp.float32) + b4_ref[...]
    h = jnp.maximum(h, 0.0)

    # Final layer: no ReLU (matches PyTorch forward). Output lane-padded.
    h = jnp.dot(h.astype(op_dtype), w5_ref[...],
                preferred_element_type=jnp.float32) + b5_ref[...]

    o_ref[...] = h.astype(o_ref.dtype)


def _round_up(x, m):
    return ((x + m - 1) // m) * m


def _pick_tb(B):
    """Largest MXU-row-filling tile that still leaves >=2 grid steps when possible."""
    for cand in (512, 256, 128):
        if B >= 2 * cand:
            return cand
    if B >= 128:
        return 128
    # Tiny batches: one sublane-aligned tile covering the whole (padded) batch.
    return _round_up(max(B, 8), 8)


def mlp_encoder(x, params, *, tb=None, use_bf16=True):
    """x: (B, in_features). params: list of (W, b), W: (fan_in, fan_out), b: (1, fan_out)."""
    B, in_f = x.shape
    out_f = params[-1][0].shape[1]

    if tb is None:
        tb = _pick_tb(B)
    Bp = _round_up(B, tb)
    if Bp != B:
        x = jnp.pad(x, ((0, Bp - B), (0, 0)))

    # Lane-dense final layer: zero-pad output columns to a multiple of 128.
    out_pad = max(128, _round_up(out_f, 128))
    w_last, b_last = params[-1]
    if out_pad != out_f:
        w_last = jnp.pad(w_last, ((0, 0), (0, out_pad - out_f)))
        b_last = jnp.pad(b_last, ((0, 0), (0, out_pad - out_f)))
    padded_params = list(params[:-1]) + [(w_last, b_last)]

    op_dtype = jnp.bfloat16 if use_bf16 else jnp.float32
    x_in = x.astype(op_dtype)

    in_specs = [pl.BlockSpec((tb, in_f), lambda i: (i, 0))]
    flat_params = []
    for (w, b) in padded_params:
        w = w.astype(op_dtype)          # MXU operands
        b = b.astype(jnp.float32)       # bias add stays in f32
        in_specs.append(pl.BlockSpec(w.shape, lambda i: (0, 0)))  # resident, DMA'd once
        in_specs.append(pl.BlockSpec(b.shape, lambda i: (0, 0)))
        flat_params.extend([w, b])

    out_spec = pl.BlockSpec((tb, out_pad), lambda i: (i, 0))

    out = pl.pallas_call(
        _mlp_kernel,
        out_shape=jax.ShapeDtypeStruct((Bp, out_pad), jnp.float32),
        grid_spec=pltpu.PrefetchScalarGridSpec(
            num_scalar_prefetch=0,
            grid=(Bp // tb,),
            in_specs=in_specs,
            out_specs=out_spec,
        ),
        compiler_params=pltpu.CompilerParams(
            dimension_semantics=("parallel",),   # batch tiles shard across TCs (v7x)
            vmem_limit_bytes=32 * 1024 * 1024,
        ),
    )(x_in, *flat_params)

    # Drop batch padding and the lane padding of the final layer.
    return out[:B, :out_f]


def init_params(key, in_features, out_features):
    """Deterministic init mimicking nn.Linear's U(-1/sqrt(fan_in), 1/sqrt(fan_in))."""
    dims = [in_features, 128, 256, 256, 128, out_features]
    params = []
    for fan_in, fan_out in zip(dims[:-1], dims[1:]):
        key, kw, kb = jax.random.split(key, 3)
        bound = 1.0 / jnp.sqrt(jnp.float32(fan_in))
        w = jax.random.uniform(kw, (fan_in, fan_out), jnp.float32, -bound, bound)
        b = jax.random.uniform(kb, (1, fan_out), jnp.float32, -bound, bound)
        params.append((w, b))
    return params


def mlp_reference(x, params):
    h = x
    for i, (w, b) in enumerate(params):
        h = h @ w + b
        if i < len(params) - 1:
            h = jnp.maximum(h, 0.0)
    return h


if __name__ == "__main__":
    key = jax.random.PRNGKey(0)
    in_features, out_features = 32, 16

    kx, kp, kx2 = jax.random.split(key, 3)
    params = init_params(kp, in_features, out_features)

    # 1) Small batch, exact (f32 operand) path — tight tolerance.
    B = 8
    x = jax.random.normal(kx, (B, in_features), jnp.float32)
    out = jax.block_until_ready(mlp_encoder(x, params, use_bf16=False))
    ref = mlp_reference(x, params)
    assert out.shape == (B, out_features), out.shape
    assert jnp.allclose(out, ref, atol=1e-4, rtol=1e-4), "f32 mismatch vs reference"

    # 2) Ragged batch exercising padding, lane-dense output, tb=128 tiles and
    #    bf16 MXU operands — looser tolerance for bf16 operand rounding.
    B2 = 260
    x2 = jax.random.normal(kx2, (B2, in_features), jnp.float32)
    out2 = jax.block_until_ready(mlp_encoder(x2, params, use_bf16=True))
    ref2 = mlp_reference(x2, params)
    assert out2.shape == (B2, out_features), out2.shape
    assert jnp.allclose(out2, ref2, atol=5e-2, rtol=5e-2), "bf16 mismatch vs reference"

    print("KERNEL_OK")
</pallas_src>

<mosaic_0001>
module attributes {stable_mosaic.version = 11 : i64} {
  func.func @_mlp_kernel(%arg0: i32, %arg1: memref<8x32xf32, #tpu.memory_space<vmem>>, %arg2: memref<32x128xf32, #tpu.memory_space<vmem>>, %arg3: memref<1x128xf32, #tpu.memory_space<vmem>>, %arg4: memref<128x256xf32, #tpu.memory_space<vmem>>, %arg5: memref<1x256xf32, #tpu.memory_space<vmem>>, %arg6: memref<256x256xf32, #tpu.memory_space<vmem>>, %arg7: memref<1x256xf32, #tpu.memory_space<vmem>>, %arg8: memref<256x128xf32, #tpu.memory_space<vmem>>, %arg9: memref<1x128xf32, #tpu.memory_space<vmem>>, %arg10: memref<128x128xf32, #tpu.memory_space<vmem>>, %arg11: memref<1x128xf32, #tpu.memory_space<vmem>>, %arg12: memref<8x128xf32, #tpu.memory_space<vmem>>) attributes {dimension_semantics = [#tpu.dimension_semantics<parallel>], iteration_bounds = array<i64: 1>, scalar_prefetch = 0 : i64, scratch_operands = 0 : i64, tpu.core_type = #tpu.core_type<tc>, window_params = [{transform_indices = @transform_0, window_bounds = array<i64: 8, 32>}, {pipeline_mode = #tpu.pipeline_mode<synchronous>, transform_indices = @transform_1, window_bounds = array<i64: 32, 128>}, {pipeline_mode = #tpu.pipeline_mode<synchronous>, transform_indices = @transform_2, window_bounds = array<i64: 1, 128>}, {pipeline_mode = #tpu.pipeline_mode<synchronous>, transform_indices = @transform_3, window_bounds = array<i64: 128, 256>}, {pipeline_mode = #tpu.pipeline_mode<synchronous>, transform_indices = @transform_4, window_bounds = array<i64: 1, 256>}, {pipeline_mode = #tpu.pipeline_mode<synchronous>, transform_indices = @transform_5, window_bounds = array<i64: 256, 256>}, {pipeline_mode = #tpu.pipeline_mode<synchronous>, transform_indices = @transform_6, window_bounds = array<i64: 1, 256>}, {pipeline_mode = #tpu.pipeline_mode<synchronous>, transform_indices = @transform_7, window_bounds = array<i64: 256, 128>}, {pipeline_mode = #tpu.pipeline_mode<synchronous>, transform_indices = @transform_8, window_bounds = array<i64: 1, 128>}, {pipeline_mode = #tpu.pipeline_mode<synchronous>, transform_indices = @transform_9, window_bounds = array<i64: 128, 128>}, {pipeline_mode = #tpu.pipeline_mode<synchronous>, transform_indices = @transform_10, window_bounds = array<i64: 1, 128>}, {transform_indices = @transform_11, window_bounds = array<i64: 8, 128>}]} {
    %c0 = arith.constant 0 : index
    %c0_0 = arith.constant 0 : index
    %0 = vector.load %arg1[%c0, %c0_0] : memref<8x32xf32, #tpu.memory_space<vmem>>, vector<8x32xf32>
    %c0_1 = arith.constant 0 : index
    %c0_2 = arith.constant 0 : index
    %1 = vector.load %arg2[%c0_1, %c0_2] : memref<32x128xf32, #tpu.memory_space<vmem>>, vector<32x128xf32>
    %cst = arith.constant dense<0.000000e+00> : vector<8x128xf32>
    %2 = tpu.matmul %0, %1, %cst {dimension_numbers = #tpu.dot_dimension_numbers<[1], [0], [0], [1], [0, 0, 1, 1], [], []>} : vector<8x32xf32>, vector<32x128xf32>, vector<8x128xf32> -> vector<8x128xf32>
    %c0_3 = arith.constant 0 : index
    %c0_4 = arith.constant 0 : index
    %3 = vector.load %arg3[%c0_3, %c0_4] : memref<1x128xf32, #tpu.memory_space<vmem>>, vector<1x128xf32>
    %4 = vector.broadcast %3 : vector<1x128xf32> to vector<8x128xf32>
    %5 = arith.addf %2, %4 : vector<8x128xf32>
    %cst_5 = arith.constant 0.000000e+00 : f32
    %6 = vector.broadcast %cst_5 : f32 to vector<8x128xf32>
    %7 = arith.maximumf %5, %6 : vector<8x128xf32>
    %c0_6 = arith.constant 0 : index
    %c0_7 = arith.constant 0 : index
    %8 = vector.load %arg4[%c0_6, %c0_7] : memref<128x256xf32, #tpu.memory_space<vmem>>, vector<128x256xf32>
    %cst_8 = arith.constant dense<0.000000e+00> : vector<8x256xf32>
    %9 = tpu.matmul %7, %8, %cst_8 {dimension_numbers = #tpu.dot_dimension_numbers<[1], [0], [0], [1], [0, 0, 1, 1], [], []>} : vector<8x128xf32>, vector<128x256xf32>, vector<8x256xf32> -> vector<8x256xf32>
    %c0_9 = arith.constant 0 : index
    %c0_10 = arith.constant 0 : index
    %10 = vector.load %arg5[%c0_9, %c0_10] : memref<1x256xf32, #tpu.memory_space<vmem>>, vector<1x256xf32>
    %11 = vector.broadcast %10 : vector<1x256xf32> to vector<8x256xf32>
    %12 = arith.addf %9, %11 : vector<8x256xf32>
    %cst_11 = arith.constant 0.000000e+00 : f32
    %13 = vector.broadcast %cst_11 : f32 to vector<8x256xf32>
    %14 = arith.maximumf %12, %13 : vector<8x256xf32>
    %c0_12 = arith.constant 0 : index
    %c0_13 = arith.constant 0 : index
    %15 = vector.load %arg6[%c0_12, %c0_13] : memref<256x256xf32, #tpu.memory_space<vmem>>, vector<256x256xf32>
    %cst_14 = arith.constant dense<0.000000e+00> : vector<8x256xf32>
    %16 = tpu.matmul %14, %15, %cst_14 {dimension_numbers = #tpu.dot_dimension_numbers<[1], [0], [0], [1], [0, 0, 1, 1], [], []>} : vector<8x256xf32>, vector<256x256xf32>, vector<8x256xf32> -> vector<8x256xf32>
    %c0_15 = arith.constant 0 : index
    %c0_16 = arith.constant 0 : index
    %17 = vector.load %arg7[%c0_15, %c0_16] : memref<1x256xf32, #tpu.memory_space<vmem>>, vector<1x256xf32>
    %18 = vector.broadcast %17 : vector<1x256xf32> to vector<8x256xf32>
    %19 = arith.addf %16, %18 : vector<8x256xf32>
    %cst_17 = arith.constant 0.000000e+00 : f32
    %20 = vector.broadcast %cst_17 : f32 to vector<8x256xf32>
    %21 = arith.maximumf %19, %20 : vector<8x256xf32>
    %c0_18 = arith.constant 0 : index
    %c0_19 = arith.constant 0 : index
    %22 = vector.load %arg8[%c0_18, %c0_19] : memref<256x128xf32, #tpu.memory_space<vmem>>, vector<256x128xf32>
    %cst_20 = arith.constant dense<0.000000e+00> : vector<8x128xf32>
    %23 = tpu.matmul %21, %22, %cst_20 {dimension_numbers = #tpu.dot_dimension_numbers<[1], [0], [0], [1], [0, 0, 1, 1], [], []>} : vector<8x256xf32>, vector<256x128xf32>, vector<8x128xf32> -> vector<8x128xf32>
    %c0_21 = arith.constant 0 : index
    %c0_22 = arith.constant 0 : index
    %24 = vector.load %arg9[%c0_21, %c0_22] : memref<1x128xf32, #tpu.memory_space<vmem>>, vector<1x128xf32>
    %25 = vector.broadcast %24 : vector<1x128xf32> to vector<8x128xf32>
    %26 = arith.addf %23, %25 : vector<8x128xf32>
    %cst_23 = arith.constant 0.000000e+00 : f32
    %27 = vector.broadcast %cst_23 : f32 to vector<8x128xf32>
    %28 = arith.maximumf %26, %27 : vector<8x128xf32>
    %c0_24 = arith.constant 0 : index
    %c0_25 = arith.constant 0 : index
    %29 = vector.load %arg10[%c0_24, %c0_25] : memref<128x128xf32, #tpu.memory_space<vmem>>, vector<128x128xf32>
    %cst_26 = arith.constant dense<0.000000e+00> : vector<8x128xf32>
    %30 = tpu.matmul %28, %29, %cst_26 {dimension_numbers = #tpu.dot_dimension_numbers<[1], [0], [0], [1], [0, 0, 1, 1], [], []>} : vector<8x128xf32>, vector<128x128xf32>, vector<8x128xf32> -> vector<8x128xf32>
    %c0_27 = arith.constant 0 : index
    %c0_28 = arith.constant 0 : index
    %31 = vector.load %arg11[%c0_27, %c0_28] : memref<1x128xf32, #tpu.memory_space<vmem>>, vector<1x128xf32>
    %32 = vector.broadcast %31 : vector<1x128xf32> to vector<8x128xf32>
    %33 = arith.addf %30, %32 : vector<8x128xf32>
    %c0_29 = arith.constant 0 : index
    %c0_30 = arith.constant 0 : index
    %34 = vector.load %arg12[%c0_29, %c0_30] : memref<8x128xf32, #tpu.memory_space<vmem>>, vector<8x128xf32>
    tpu.vector_store %arg12[%c0_29, %c0_30], %33 {strides = array<i32>} : memref<8x128xf32, #tpu.memory_space<vmem>>, vector<8x128xf32>,
    return
  }
  func.func @transform_0(%arg0: i32) -> (i32, i32) {
    %c0_i32 = arith.constant 0 : i32
    %c0_i32_0 = arith.constant 0 : i32
    return %arg0, %c0_i32 : i32, i32
  }
  func.func @transform_1(%arg0: i32) -> (i32, i32) {
    %c0_i32 = arith.constant 0 : i32
    %c0_i32_0 = arith.constant 0 : i32
    %c0_i32_1 = arith.constant 0 : i32
    return %c0_i32, %c0_i32_0 : i32, i32
  }
  func.func @transform_2(%arg0: i32) -> (i32, i32) {
    %c0_i32 = arith.constant 0 : i32
    %c0_i32_0 = arith.constant 0 : i32
    %c0_i32_1 = arith.constant 0 : i32
    return %c0_i32, %c0_i32_0 : i32, i32
  }
  func.func @transform_3(%arg0: i32) -> (i32, i32) {
    %c0_i32 = arith.constant 0 : i32
    %c0_i32_0 = arith.constant 0 : i32
    %c0_i32_1 = arith.constant 0 : i32
    return %c0_i32, %c0_i32_0 : i32, i32
  }
  func.func @transform_4(%arg0: i32) -> (i32, i32) {
    %c0_i32 = arith.constant 0 : i32
    %c0_i32_0 = arith.constant 0 : i32
    %c0_i32_1 = arith.constant 0 : i32
    return %c0_i32, %c0_i32_0 : i32, i32
  }
  func.func @transform_5(%arg0: i32) -> (i32, i32) {
    %c0_i32 = arith.constant 0 : i32
    %c0_i32_0 = arith.constant 0 : i32
    %c0_i32_1 = arith.constant 0 : i32
    return %c0_i32, %c0_i32_0 : i32, i32
  }
  func.func @transform_6(%arg0: i32) -> (i32, i32) {
    %c0_i32 = arith.constant 0 : i32
    %c0_i32_0 = arith.constant 0 : i32
    %c0_i32_1 = arith.constant 0 : i32
    return %c0_i32, %c0_i32_0 : i32, i32
  }
  func.func @transform_7(%arg0: i32) -> (i32, i32) {
    %c0_i32 = arith.constant 0 : i32
    %c0_i32_0 = arith.constant 0 : i32
    %c0_i32_1 = arith.constant 0 : i32
    return %c0_i32, %c0_i32_0 : i32, i32
  }
  func.func @transform_8(%arg0: i32) -> (i32, i32) {
    %c0_i32 = arith.constant 0 : i32
    %c0_i32_0 = arith.constant 0 : i32
    %c0_i32_1 = arith.constant 0 : i32
    return %c0_i32, %c0_i32_0 : i32, i32
  }
  func.func @transform_9(%arg0: i32) -> (i32, i32) {
    %c0_i32 = arith.constant 0 : i32
    %c0_i32_0 = arith.constant 0 : i32
    %c0_i32_1 = arith.constant 0 : i32
    return %c0_i32, %c0_i32_0 : i32, i32
  }
  func.func @transform_10(%arg0: i32) -> (i32, i32) {
    %c0_i32 = arith.constant 0 : i32
    %c0_i32_0 = arith.constant 0 : i32
    %c0_i32_1 = arith.constant 0 : i32
    return %c0_i32, %c0_i32_0 : i32, i32
  }
  func.func @transform_11(%arg0: i32) -> (i32, i32) {
    %c0_i32 = arith.constant 0 : i32
    %c0_i32_0 = arith.constant 0 : i32
    return %arg0, %c0_i32 : i32, i32
  }
}

</mosaic_0001>

<bundles_post_ra>
// kernel: tpu_custom_call.1
= control target key start
LH: loop header
LB: loop body
LE: loop exit
PB: predicated region body
PF: predicated region fallthrough
CT: control target
= control target key end

     0   :  { %16 = vsyncpa [#allocation3], 0  ;;  %s1340_s0 = inlined_call_operand.hbm [shape: f32[8,32], index: 0, kind: input, shape index: {}]   ;;  %s1341_s1 = inlined_call_operand.hbm [shape: f32[32,128], index: 1, kind: input, shape index: {}]   ;;  %s1342_s2 = inlined_call_operand.vmem [shape: f32[1,128], index: 2, kind: input, shape index: {}]   ;;  %s1343_s3 = inlined_call_operand.hbm [shape: f32[128,256], index: 3, kind: input, shape index: {}]   ;;  %s1344_s4 = inlined_call_operand.vmem [shape: f32[1,256], index: 4, kind: input, shape index: {}]   ;;  %s1345_s5 = inlined_call_operand.hbm [shape: f32[256,256], index: 5, kind: input, shape index: {}]   ;;  %s1346_s6 = inlined_call_operand.vmem [shape: f32[1,256], index: 6, kind: input, shape index: {}]   ;;  %s1347_s7 = inlined_call_operand.hbm [shape: f32[256,128], index: 7, kind: input, shape index: {}]   ;;  %s1348_s8 = inlined_call_operand.vmem [shape: f32[1,128], index: 8, kind: input, shape index: {}]   ;;  %s1349_s9 = inlined_call_operand.hbm [shape: f32[128,128], index: 9, kind: input, shape index: {}]   ;;  %s1350_s10 = inlined_call_operand.vmem [shape: f32[1,128], index: 10, kind: input, shape index: {}]   ;;  %s1351_s11 = inlined_call_operand.hbm [shape: f32[8,128], index: 11, kind: output, shape index: {}]  }
   0x1   :  { %17 = vsyncpa [#allocation6], 0 }
   0x2   :  { %18 = vsyncpa [#allocation9], 0 }
   0x3   :  { %19 = vsyncpa [#allocation12], 0 }
   0x4   :  { %20 = vsyncpa [#allocation4], 0  ;;  %s1137_s17 = smov [#allocation5]   ;;  %s973_s21 = scalar_lea.hbm %s1341_s1, 512 }
   0x5   :  { %s36_s18 = sshll.u32 %s1137_s17, 4  ;;  %p974_p0 = scmp.ne.s32.totalorder %s1341_s1, %s973_s21  ;;  %s37_s18 = int_to_ptr.vmem [resolvable:$true] %s36_s18 }
   0x6   :  { %p977_p1 = scmp.lt.u32.totalorder %s973_s21, %s1341_s1 }
   0x8   :  { %p979_p2 = pnand %p977_p1, %p974_p0 }
   0xa   :  { %982 = shalt.err (!%p979_p2)
}
   0xb   :  { %s983_s26 = scalar_lea.vmem %s37_s18, 512  ;;  %p988_p4 = scmp.lt.s32.totalorder %s37_s18, %s37_s18 }
   0xc   :  { %p984_p3 = scmp.ne.s32.totalorder %s37_s18, %s983_s26  ;;  %p989_p5 = scmp.lt.s32.totalorder %s983_s26, %s983_s26 }
   0xe   :  { %p990_p6 = por %p989_p5, %p988_p4 }
  0x10   :  { %p991_p7 = pnand %p990_p6, %p984_p3 }
  0x12   :  { %994 = shalt.err (!%p991_p7)
}
  0x13   :  { %s1138_s27 = smov 128   ;;  %s1139_s28 = smov 8  }
  0x14   :  { %42 = dma.hbm_to_vmem [thread:$0]  %s1341_s1, 512, %s37_s18, [#allocation6], %s1138_s27, %s1138_s27, %s1139_s28  }
  0x15   :  { %s1140_s12 = smov [#allocation8]   ;;  %s1141_s14 = smov [#allocation2]  }
  0x16   :  { %s64_s13 = sshll.u32 %s1140_s12, 4  ;;  %s27_s15 = sshll.u32 %s1141_s14, 4  ;;  %s65_s13 = int_to_ptr.vmem [resolvable:$true] %s64_s13  ;;  %s28_s15 = int_to_ptr.vmem [resolvable:$true] %s27_s15 }
  0x17   :  { %s995_s19 = scalar_lea.hbm %s1345_s5, 8192 }
  0x18   :  { %p996_p8 = scmp.ne.s32.totalorder %s1345_s5, %s995_s19  ;;  %p999_p9 = scmp.lt.u32.totalorder %s995_s19, %s1345_s5 }
  0x1a   :  { %p1001_p10 = pnand %p999_p9, %p996_p8 }
  0x1c   :  { %1004 = shalt.err (!%p1001_p10)
}
  0x1d   :  { %s1005_s1 = scalar_lea.vmem %s65_s13, 8192  ;;  %p1010_p12 = scmp.lt.s32.totalorder %s65_s13, %s65_s13 }
  0x1e   :  { %p1006_p11 = scmp.ne.s32.totalorder %s65_s13, %s1005_s1  ;;  %p1011_p13 = scmp.lt.s32.totalorder %s1005_s1, %s1005_s1 }
  0x20   :  { %p1012_p0 = por %p1011_p13, %p1010_p12 }
  0x22   :  { %p1013_p1 = pnand %p1012_p0, %p1006_p11 }
  0x24   :  { %1016 = shalt.err (!%p1013_p1)
}
  0x25   :  { %s1142_s18 = smov 256   ;;  %s1143_s24 = smov 16  }
  0x26   :  { %70 = dma.hbm_to_vmem [thread:$0]  %s1345_s5, 8192, %s65_s13, [#allocation9], %s1142_s18, %s1142_s18, %s1143_s24  }
  0x27   :  { %s1017_s12 = scalar_lea.hbm %s1340_s0, 128 }
  0x28   :  { %p1018_p2 = scmp.ne.s32.totalorder %s1340_s0, %s1017_s12  ;;  %p1021_p3 = scmp.lt.u32.totalorder %s1017_s12, %s1340_s0 }
  0x2a   :  { %p1023_p4 = pnand %p1021_p3, %p1018_p2 }
  0x2c   :  { %1026 = shalt.err (!%p1023_p4)
}
  0x2d   :  { %s1027_s20 = scalar_lea.vmem %s28_s15, 128  ;;  %p1032_p6 = scmp.lt.s32.totalorder %s28_s15, %s28_s15 }
  0x2e   :  { %p1028_p5 = scmp.ne.s32.totalorder %s28_s15, %s1027_s20  ;;  %p1033_p7 = scmp.lt.s32.totalorder %s1027_s20, %s1027_s20 }
  0x30   :  { %p1034_p8 = por %p1033_p7, %p1032_p6 }
  0x32   :  { %p1035_p9 = pnand %p1034_p8, %p1028_p5 }
  0x34   :  { %1038 = shalt.err (!%p1035_p9)
}
  0x35   :  { %30 = dma.hbm_to_vmem [thread:$0]  %s1340_s0, 128, %s28_s15, [#allocation3]  }
  0x36   :  { %s1144_s21 = smov [#allocation7]   ;;  %s1145_s23 = smov [#allocation10]  }
  0x37   :  { %s50_s22 = sshll.u32 %s1144_s21, 4  ;;  %s78_s1 = sshll.u32 %s1145_s23, 4  ;;  %s51_s22 = int_to_ptr.vmem [resolvable:$true] %s50_s22  ;;  %s79_s1 = int_to_ptr.vmem [resolvable:$true] %s78_s1 }
  0x38   :  { %s1039_s29 = scalar_lea.hbm %s1343_s3, 4096 }
  0x39   :  { %p1040_p10 = scmp.ne.s32.totalorder %s1343_s3, %s1039_s29  ;;  %p1043_p11 = scmp.lt.u32.totalorder %s1039_s29, %s1343_s3 }
  0x3b   :  { %p1045_p12 = pnand %p1043_p11, %p1040_p10 }
  0x3d   :  { %1048 = shalt.err (!%p1045_p12)
}
  0x3e   :  { %s1049_s0 = scalar_lea.vmem %s51_s22, 4096  ;;  %p1054_p0 = scmp.lt.s32.totalorder %s51_s22, %s51_s22 }
  0x3f   :  { %p1050_p13 = scmp.ne.s32.totalorder %s51_s22, %s1049_s0  ;;  %p1055_p1 = scmp.lt.s32.totalorder %s1049_s0, %s1049_s0 }
  0x41   :  { %p1056_p2 = por %p1055_p1, %p1054_p0 }
  0x43   :  { %p1057_p3 = pnand %p1056_p2, %p1050_p13 }
  0x45   :  { %1060 = shalt.err (!%p1057_p3)
}
  0x46   :  { %56 = dma.hbm_to_vmem [thread:$0]  %s1343_s3, 4096, %s51_s22, [#allocation6], %s1142_s18, %s1142_s18, %s1143_s24  }
  0x47   :  { %s1061_s5 = scalar_lea.hbm %s1347_s7, 4096 }
  0x48   :  { %p1062_p4 = scmp.ne.s32.totalorder %s1347_s7, %s1061_s5  ;;  %p1065_p5 = scmp.lt.u32.totalorder %s1061_s5, %s1347_s7 }
  0x4a   :  { %p1067_p6 = pnand %p1065_p5, %p1062_p4 }
  0x4c   :  { %1070 = shalt.err (!%p1067_p6)
}
  0x4d   :  { %s1071_s26 = scalar_lea.vmem %s79_s1, 4096  ;;  %p1076_p8 = scmp.lt.s32.totalorder %s79_s1, %s79_s1 }
  0x4e   :  { %p1072_p7 = scmp.ne.s32.totalorder %s79_s1, %s1071_s26  ;;  %p1077_p9 = scmp.lt.s32.totalorder %s1071_s26, %s1071_s26 }
  0x50   :  { %p1078_p10 = por %p1077_p9, %p1076_p8 }
  0x52   :  { %p1079_p11 = pnand %p1078_p10, %p1072_p7 }
  0x54   :  { %1082 = shalt.err (!%p1079_p11)
}
  0x55   :  { %84 = dma.hbm_to_vmem [thread:$0]  %s1347_s7, 4096, %s79_s1, [#allocation9], %s1138_s27, %s1138_s27, %s1139_s28  }
  0x56   :  { %s1146_s24 = smov [#allocation11]   ;;  %s1083_s12 = scalar_lea.hbm %s1349_s9, 2048 }
  0x57   :  { %s92_s22 = sshll.u32 %s1146_s24, 4  ;;  %p1084_p12 = scmp.ne.s32.totalorder %s1349_s9, %s1083_s12  ;;  %s93_s22 = int_to_ptr.vmem [resolvable:$true] %s92_s22 }
  0x58   :  { %p1087_p13 = scmp.lt.u32.totalorder %s1083_s12, %s1349_s9 }
  0x5a   :  { %p1089_p0 = pnand %p1087_p13, %p1084_p12 }
  0x5c   :  { %1092 = shalt.err (!%p1089_p0)
}
  0x5d   :  { %s1093_s17 = scalar_lea.vmem %s93_s22, 2048  ;;  %p1098_p2 = scmp.lt.s32.totalorder %s93_s22, %s93_s22 }
  0x5e   :  { %p1094_p1 = scmp.ne.s32.totalorder %s93_s22, %s1093_s17  ;;  %p1099_p3 = scmp.lt.s32.totalorder %s1093_s17, %s1093_s17 }
  0x60   :  { %p1100_p4 = por %p1099_p3, %p1098_p2 }
  0x62   :  { %p1101_p5 = pnand %p1100_p4, %p1094_p1 }
  0x64   :  { %1104 = shalt.err (!%p1101_p5)
}
  0x65   :  { %98 = dma.hbm_to_vmem [thread:$0]  %s1349_s9, 2048, %s93_s22, [#allocation12], %s1138_s27, %s1138_s27, %s1139_s28  }
  0x66   :  { %1127 = dma.done.wait [#allocation3], 128  }
  0x67   :  { %1128 = vsyncadd [#allocation3], 4294967168 }
  0x68   :  { %1129 = dma.done.wait [#allocation6], 4608  }
  0x69   :  { %1130 = vsyncadd [#allocation6], 4294962688 }
  0x6a   :  { %1131 = dma.done.wait [#allocation9], 12288  }
  0x6b   :  { %1132 = vsyncadd [#allocation9], 4294955008 }
  0x6c   :  { %1133 = dma.done.wait [#allocation12], 2048  }
  0x6d   :  { %1134 = vsyncadd [#allocation12], 4294965248  ;;  %v1147_v0 = vmov 0.0|0.0   ;;  %vm1148_vm0 = vmmov 0   ;;  %v1149_v1 = vmov 0.0   ;;  %v120_v2 = vld [vmem:[#allocation5] sm:$0xff] }
  0x6e   :  { %801 = vmatprep.subr.bf16.mxu0 %v1147_v0  ;;  %763 = vmatprep.mubr.msk.f32.mxu0 %vm1148_vm0, %v1149_v1  ;;  %v121_v3 = vld [vmem:[#allocation5 + $0x8] sm:$0xff]  ;;  %v122_v4 = vld [vmem:[#allocation5 + $0x10] sm:$0xff]  ;;  %v123_v6 = vld [vmem:[#allocation5 + $0x18] sm:$0xff]  ;;  %vm131_vm1 = vcmask 261120   ;;  %s1150_s21 = smov [#allocation13]  }
  0x6f   :  { %314 = vmatprep.mubr.f32.mxu1 %v1149_v1  ;;  %v802_v5 = vpack.c.bf16 %v121_v3, %v120_v2  ;;  %v207_v7 = vld [vmem:[#allocation7 + $0x8] sm:$0xff]  ;;  %v209_v8 = vld [vmem:[#allocation7 + $0x18] sm:$0xff]  ;;  %v206_v9 = vld [vmem:[#allocation7] sm:$0xff]  ;;  %v805_v11 = vpack.c.bf16 %v123_v6, %v122_v4  ;;  %s682_s23 = sshll.u32 %s1150_s21, 4  ;;  %s683_s23 = int_to_ptr.vmem [resolvable:$true] %s682_s23 }
  0x70   :  { %v208_v10 = vld [vmem:[#allocation7 + $0x10] sm:$0xff]  ;;  %v807_v12 = vpack.c.bf16 %v209_v8, %v207_v7  ;;  %v211_v14 = vld [vmem:[#allocation7 + $0x28] sm:$0xff]  ;;  %v213_v15 = vld [vmem:[#allocation7 + $0x38] sm:$0xff]  ;;  %s1105_s25 = scalar_lea.vmem %s683_s23, 128  ;;  %p1110_p7 = scmp.lt.s32.totalorder %s683_s23, %s683_s23 }
  0x71   :  { %803 = vmatpush3.bf16.msra.mxu0 %v802_v5  ;;  %v809_v13 = vpack.c.bf16 %v208_v10, %v206_v9  ;;  %v210_v16 = vld [vmem:[#allocation7 + $0x20] sm:$0xff]  ;;  %v811_v17 = vpack.c.bf16 %v213_v15, %v211_v14  ;;  %v212_v18 = vld [vmem:[#allocation7 + $0x30] sm:$0xff]  ;;  %v215_v19 = vld [vmem:[#allocation7 + $0x48] sm:$0xff]  ;;  %p1106_p6 = scmp.ne.s32.totalorder %s683_s23, %s1105_s25  ;;  %p1111_p8 = scmp.lt.s32.totalorder %s1105_s25, %s1105_s25 }
  0x72   :  { %804 = vmatprep.subr.bf16.mxu0 %v1147_v0  ;;  %v217_v20 = vld [vmem:[#allocation7 + $0x58] sm:$0xff]  ;;  %808 = vmatprep.subr.bf16.mxu1 %v807_v12  ;;  %v813_v21 = vpack.c.bf16 %v212_v18, %v210_v16  ;;  %v214_v24 = vld [vmem:[#allocation7 + $0x40] sm:$0xff]  ;;  %v216_v25 = vld [vmem:[#allocation7 + $0x50] sm:$0xff] }
  0x73   :  { %810 = vmatpush1.bf16.msra.mxu1 %v809_v13  ;;  %v119_v22 = vld [vmem:[#allocation2] sm:$0xff]  ;;  %v815_v23 = vpack.c.bf16 %v217_v20, %v215_v19  ;;  %v219_v26 = vld [vmem:[#allocation7 + $0x68] sm:$0xff]  ;;  %v817_v28 = vpack.c.bf16 %v216_v25, %v214_v24  ;;  %v218_v30 = vld [vmem:[#allocation7 + $0x60] sm:$0xff]  ;;  %p1112_p9 = por %p1111_p8, %p1110_p7 }
  0x74   :  { %812 = vmatprep.subr.bf16.mxu1 %v811_v17  ;;  %v221_v27 = vld [vmem:[#allocation7 + $0x78] sm:$0xff]  ;;  %v220_v31 = vld [vmem:[#allocation7 + $0x70] sm:$0xff]  ;;  %v223_v32 = vld [vmem:[#allocation7 + $0x88] sm:$0xff] }
  0x75   :  { %806 = vmatpush3.bf16.msra.mxu0 %v805_v11  ;;  %v819_v29 = vpack.c.bf16 %v221_v27, %v219_v26  ;;  %v225_v33 = vld [vmem:[#allocation7 + $0x98] sm:$0xff]  ;;  %v821_v34 = vpack.c.bf16 %v220_v31, %v218_v30  ;;  %v222_v36 = vld [vmem:[#allocation7 + $0x80] sm:$0xff]  ;;  %v224_v37 = vld [vmem:[#allocation7 + $0x90] sm:$0xff]  ;;  %p1113_p10 = pnand %p1112_p9, %p1106_p6 }
  0x76   :  { %v823_v35 = vpack.c.bf16 %v225_v33, %v223_v32  ;;  %v227_v38 = vld [vmem:[#allocation7 + $0xa8] sm:$0xff]  ;;  %v229_v39 = vld [vmem:[#allocation7 + $0xb8] sm:$0xff]  ;;  %v825_v40 = vpack.c.bf16 %v224_v37, %v222_v36  ;;  %v226_v42 = vld [vmem:[#allocation7 + $0xa0] sm:$0xff] }
  0x77   :  { %814 = vmatpush1.bf16.msra.mxu1 %v813_v21  ;;  %v827_v41 = vpack.c.bf16 %v229_v39, %v227_v38  ;;  %v228_v43 = vld [vmem:[#allocation7 + $0xb0] sm:$0xff]  ;;  %v231_v44 = vld [vmem:[#allocation7 + $0xc8] sm:$0xff]  ;;  %v233_v45 = vld [vmem:[#allocation7 + $0xd8] sm:$0xff] }
  0x78   :  { %764 = vmatmul.mubr.msk.f32.vlgmr.msra.gmra.mrb[0].mxu0 %vm131_vm1, %v119_v22  ;;  %816 = vmatprep.subr.bf16.mxu1 %v815_v23  ;;  %v829_v46 = vpack.c.bf16 %v228_v43, %v226_v42  ;;  %v831_v47 = vpack.c.bf16 %v233_v45, %v231_v44  ;;  %v230_v48 = vld [vmem:[#allocation7 + $0xc0] sm:$0xff]  ;;  %v232_v49 = vld [vmem:[#allocation7 + $0xd0] sm:$0xff]  ;;  %v235_v51 = vld [vmem:[#allocation7 + $0xe8] sm:$0xff] }
  0x79   :  { %v833_v50 = vpack.c.bf16 %v232_v49, %v230_v48  ;;  %v237_v52 = vld [vmem:[#allocation7 + $0xf8] sm:$0xff]  ;;  %v234_v54 = vld [vmem:[#allocation7 + $0xe0] sm:$0xff]  ;;  %v236_v55 = vld [vmem:[#allocation7 + $0xf0] sm:$0xff] }
  0x7a   :  { %v835_v53 = vpack.c.bf16 %v237_v52, %v235_v51  ;;  %v837_v56 = vpack.c.bf16 %v236_v55, %v234_v54  ;;  %v324_v57 = vld [vmem:[#allocation8 + $0x8] sm:$0xff]  ;;  %v326_v58 = vld [vmem:[#allocation8 + $0x18] sm:$0xff]  ;;  %v323_v59 = vld [vmem:[#allocation8] sm:$0xff] }
  0x7b   :  { %818 = vmatpush1.bf16.msra.mxu1 %v817_v28  ;;  %v839_v60 = vpack.c.bf16 %v326_v58, %v324_v57  ;;  %v325_v61 = vld [vmem:[#allocation8 + $0x10] sm:$0xff]  ;;  %v328_v62 = vld [vmem:[#allocation8 + $0x28] sm:$0xff]  ;;  %v330_v63 = vld [vmem:[#allocation8 + $0x38] sm:$0xff] }
  0x7c   :  { %820 = vmatprep.subr.bf16.mxu1 %v819_v29  ;;  %v841_v2 = vpack.c.bf16 %v325_v61, %v323_v59  ;;  %v843_v3 = vpack.c.bf16 %v330_v63, %v328_v62  ;;  %v327_v4 = vld [vmem:[#allocation8 + $0x20] sm:$0xff]  ;;  %v329_v5 = vld [vmem:[#allocation8 + $0x30] sm:$0xff]  ;;  %v332_v6 = vld [vmem:[#allocation8 + $0x48] sm:$0xff] }
  0x7d   :  { %840 = vmatprep.subr.bf16.mxu0 %v839_v60  ;;  %v334_v7 = vld [vmem:[#allocation8 + $0x58] sm:$0xff]  ;;  %v845_v8 = vpack.c.bf16 %v329_v5, %v327_v4  ;;  %v331_v10 = vld [vmem:[#allocation8 + $0x40] sm:$0xff]  ;;  %v333_v11 = vld [vmem:[#allocation8 + $0x50] sm:$0xff] }
  0x7e   :  { %842 = vmatpush1.bf16.msra.mxu0 %v841_v2  ;;  %v847_v9 = vpack.c.bf16 %v334_v7, %v332_v6  ;;  %v336_v12 = vld [vmem:[#allocation8 + $0x68] sm:$0xff]  ;;  %v338_v13 = vld [vmem:[#allocation8 + $0x78] sm:$0xff]  ;;  %v849_v14 = vpack.c.bf16 %v333_v11, %v331_v10  ;;  %v335_v16 = vld [vmem:[#allocation8 + $0x60] sm:$0xff] }
  0x7f   :  { %822 = vmatpush1.bf16.msra.mxu1 %v821_v34  ;;  %844 = vmatprep.subr.bf16.mxu0 %v843_v3  ;;  %v851_v15 = vpack.c.bf16 %v338_v13, %v336_v12  ;;  %v337_v17 = vld [vmem:[#allocation8 + $0x70] sm:$0xff]  ;;  %v340_v18 = vld [vmem:[#allocation8 + $0x88] sm:$0xff]  ;;  %v342_v19 = vld [vmem:[#allocation8 + $0x98] sm:$0xff] }
  0x80   :  { %824 = vmatprep.subr.bf16.mxu1 %v823_v35  ;;  %v853_v20 = vpack.c.bf16 %v337_v17, %v335_v16  ;;  %v855_v21 = vpack.c.bf16 %v342_v19, %v340_v18  ;;  %v339_v22 = vld [vmem:[#allocation8 + $0x80] sm:$0xff]  ;;  %v341_v23 = vld [vmem:[#allocation8 + $0x90] sm:$0xff]  ;;  %v344_v24 = vld [vmem:[#allocation8 + $0xa8] sm:$0xff] }
  0x81   :  { %v346_v25 = vld [vmem:[#allocation8 + $0xb8] sm:$0xff]  ;;  %v857_v26 = vpack.c.bf16 %v341_v23, %v339_v22  ;;  %v343_v28 = vld [vmem:[#allocation8 + $0xa0] sm:$0xff]  ;;  %v345_v29 = vld [vmem:[#allocation8 + $0xb0] sm:$0xff] }
  0x82   :  { %846 = vmatpush1.bf16.msra.mxu0 %v845_v8  ;;  %v859_v27 = vpack.c.bf16 %v346_v25, %v344_v24  ;;  %v348_v30 = vld [vmem:[#allocation8 + $0xc8] sm:$0xff]  ;;  %v350_v31 = vld [vmem:[#allocation8 + $0xd8] sm:$0xff]  ;;  %v861_v32 = vpack.c.bf16 %v345_v29, %v343_v28  ;;  %v347_v34 = vld [vmem:[#allocation8 + $0xc0] sm:$0xff] }
  0x83   :  { %826 = vmatpush1.bf16.msra.mxu1 %v825_v40  ;;  %848 = vmatprep.subr.bf16.mxu0 %v847_v9  ;;  %v863_v33 = vpack.c.bf16 %v350_v31, %v348_v30  ;;  %v349_v35 = vld [vmem:[#allocation8 + $0xd0] sm:$0xff]  ;;  %v352_v36 = vld [vmem:[#allocation8 + $0xe8] sm:$0xff]  ;;  %v354_v37 = vld [vmem:[#allocation8 + $0xf8] sm:$0xff] }
  0x84   :  { %828 = vmatprep.subr.bf16.mxu1 %v827_v41  ;;  %v865_v38 = vpack.c.bf16 %v349_v35, %v347_v34  ;;  %v867_v39 = vpack.c.bf16 %v354_v37, %v352_v36  ;;  %v351_v40 = vld [vmem:[#allocation8 + $0xe0] sm:$0xff]  ;;  %v353_v41 = vld [vmem:[#allocation8 + $0xf0] sm:$0xff]  ;;  %v356_v42 = vld [vmem:[#allocation8 + $0x108] sm:$0xff] }
  0x85   :  { %v358_v43 = vld [vmem:[#allocation8 + $0x118] sm:$0xff]  ;;  %v869_v44 = vpack.c.bf16 %v353_v41, %v351_v40  ;;  %v360_v48 = vld [vmem:[#allocation8 + $0x128] sm:$0xff]  ;;  %v359_v52 = vld [vmem:[#allocation8 + $0x120] sm:$0xff] }
  0x86   :  { %850 = vmatpush1.bf16.msra.mxu0 %v849_v14  ;;  %v871_v45 = vpack.c.bf16 %v358_v43, %v356_v42  ;;  %v362_v49 = vld [vmem:[#allocation8 + $0x138] sm:$0xff]  ;;  %v364_v54 = vld [vmem:[#allocation8 + $0x148] sm:$0xff]  ;;  %v363_v58 = vld [vmem:[#allocation8 + $0x140] sm:$0xff] }
  0x87   :  { %830 = vmatpush1.bf16.msra.mxu1 %v829_v46  ;;  %852 = vmatprep.subr.bf16.mxu0 %v851_v15  ;;  %v355_v46 = vld [vmem:[#allocation8 + $0x100] sm:$0xff]  ;;  %v875_v51 = vpack.c.bf16 %v362_v49, %v360_v48  ;;  %v366_v55 = vld [vmem:[#allocation8 + $0x158] sm:$0xff]  ;;  %v365_v59 = vld [vmem:[#allocation8 + $0x150] sm:$0xff] }
  0x88   :  { %832 = vmatprep.subr.bf16.mxu1 %v831_v47  ;;  %v357_v47 = vld [vmem:[#allocation8 + $0x110] sm:$0xff]  ;;  %v879_v57 = vpack.c.bf16 %v366_v55, %v364_v54  ;;  %v368_v60 = vld [vmem:[#allocation8 + $0x168] sm:$0xff]  ;;  %v370_v61 = vld [vmem:[#allocation8 + $0x178] sm:$0xff]  ;;  %v881_v62 = vpack.c.bf16 %v365_v59, %v363_v58 }
  0x89   :  { %v883_v63 = vpack.c.bf16 %v370_v61, %v368_v60  ;;  %v367_v2 = vld [vmem:[#allocation8 + $0x160] sm:$0xff]  ;;  %v369_v3 = vld [vmem:[#allocation8 + $0x170] sm:$0xff]  ;;  %v372_v4 = vld [vmem:[#allocation8 + $0x188] sm:$0xff] }
  0x8a   :  { %854 = vmatpush1.bf16.msra.mxu0 %v853_v20  ;;  %v374_v5 = vld [vmem:[#allocation8 + $0x198] sm:$0xff]  ;;  %v885_v6 = vpack.c.bf16 %v369_v3, %v367_v2  ;;  %v371_v8 = vld [vmem:[#allocation8 + $0x180] sm:$0xff]  ;;  %v373_v9 = vld [vmem:[#allocation8 + $0x190] sm:$0xff] }
  0x8b   :  { %834 = vmatpush1.bf16.msra.mxu1 %v833_v50  ;;  %856 = vmatprep.subr.bf16.mxu0 %v855_v21  ;;  %v873_v50 = vpack.c.bf16 %v357_v47, %v355_v46  ;;  %v887_v7 = vpack.c.bf16 %v374_v5, %v372_v4  ;;  %v376_v10 = vld [vmem:[#allocation8 + $0x1a8] sm:$0xff]  ;;  %v378_v11 = vld [vmem:[#allocation8 + $0x1b8] sm:$0xff]  ;;  %v889_v12 = vpack.c.bf16 %v373_v9, %v371_v8  ;;  %v375_v14 = vld [vmem:[#allocation8 + $0x1a0] sm:$0xff] }
  0x8c   :  { %836 = vmatprep.subr.bf16.mxu1 %v835_v53  ;;  %v361_v53 = vld [vmem:[#allocation8 + $0x130] sm:$0xff]  ;;  %v891_v13 = vpack.c.bf16 %v378_v11, %v376_v10  ;;  %v380_v16 = vld [vmem:[#allocation8 + $0x1c8] sm:$0xff]  ;;  %v382_v17 = vld [vmem:[#allocation8 + $0x1d8] sm:$0xff]  ;;  %v240_v11 = vlaneseq }
  0x8d   :  { %v377_v15 = vld [vmem:[#allocation8 + $0x1b0] sm:$0xff]  ;;  %v895_v19 = vpack.c.bf16 %v382_v17, %v380_v16  ;;  %v694_v20 = vld [vmem:[%s1342_s2] ss:$0 sm:$0xff]  ;;  %v379_v25 = vld [vmem:[#allocation8 + $0x1c0] sm:$0xff] }
  0x8e   :  { %858 = vmatpush1.bf16.msra.mxu0 %v857_v26  ;;  %v893_v18 = vpack.c.bf16 %v377_v15, %v375_v14  ;;  %v381_v26 = vld [vmem:[#allocation8 + $0x1d0] sm:$0xff]  ;;  %v384_v28 = vld [vmem:[#allocation8 + $0x1e8] sm:$0xff]  ;;  %v386_v29 = vld [vmem:[#allocation8 + $0x1f8] sm:$0xff] }
  0x8f   :  { %838 = vmatpush1.bf16.msra.mxu1 %v837_v56  ;;  %860 = vmatprep.subr.bf16.mxu0 %v859_v27  ;;  %v877_v56 = vpack.c.bf16 %v361_v53, %v359_v52  ;;  %v897_v27 = vpack.c.bf16 %v381_v26, %v379_v25  ;;  %v899_v30 = vpack.c.bf16 %v386_v29, %v384_v28  ;;  %v383_v31 = vld [vmem:[#allocation8 + $0x1e0] sm:$0xff]  ;;  %v489_v35 = vld [vmem:[#allocation10 + $0x88] sm:$0xff]  ;;  %v491_v40 = vld [vmem:[#allocation10 + $0x98] sm:$0xff] }
  0x90   :  { %v488_v34 = vld [vmem:[#allocation10 + $0x80] sm:$0xff]  ;;  %v474_v43 = vld [vmem:[#allocation10 + $0x10] sm:$0xff]  ;;  %v493_v46 = vld [vmem:[#allocation10 + $0xa8] sm:$0xff] }
  0x91   :  { %v472_v36 = vld [vmem:[#allocation10] sm:$0xff]  ;;  %v903_v37 = vpack.c.bf16 %v489_v35, %v488_v34  ;;  %v495_v52 = vld [vmem:[#allocation10 + $0xb8] sm:$0xff]  ;;  %v478_v55 = vld [vmem:[#allocation10 + $0x30] sm:$0xff] }
  0x92   :  { %862 = vmatpush1.bf16.msra.mxu0 %v861_v32  ;;  %v385_v32 = vld [vmem:[#allocation8 + $0x1f0] sm:$0xff]  ;;  %v476_v49 = vld [vmem:[#allocation10 + $0x20] sm:$0xff]  ;;  %v497_v58 = vld [vmem:[#allocation10 + $0xc8] sm:$0xff] }
  0x93   :  { %864 = vmatprep.subr.bf16.mxu0 %v863_v33  ;;  %v901_v33 = vpack.c.bf16 %v385_v32, %v383_v31  ;;  %904 = vmatprep.subr.bf16.mxu1 %v903_v37  ;;  %v480_v61 = vld [vmem:[#allocation10 + $0x40] sm:$0xff]  ;;  %v499_v2 = vld [vmem:[#allocation10 + $0xd8] sm:$0xff]  ;;  %v482_v5 = vld [vmem:[#allocation10 + $0x50] sm:$0xff] }
  0x94   :  { %v501_v8 = vld [vmem:[#allocation10 + $0xe8] sm:$0xff]  ;;  %v238_v14 = vld [vmem:[%s1344_s4] sm:$0x3] }
  0x95   :  { %v485_v25 = vld [vmem:[#allocation10 + $0x68] sm:$0xff]  ;;  %v503_v28 = vld [vmem:[#allocation10 + $0xf8] sm:$0xff] }
  0x96   :  { %866 = vmatpush1.bf16.msra.mxu0 %v865_v38  ;;  %v473_v38 = vld [vmem:[#allocation10 + $0x8] sm:$0xff]  ;;  %v487_v31 = vld [vmem:[#allocation10 + $0x78] sm:$0xff] }
  0x97   :  { %868 = vmatprep.subr.bf16.mxu0 %v867_v39  ;;  %v490_v39 = vld [vmem:[#allocation10 + $0x90] sm:$0xff]  ;;  %v905_v41 = vpack.c.bf16 %v473_v38, %v472_v36 }
  0x98   :  { %v907_v42 = vpack.c.bf16 %v491_v40, %v490_v39  ;;  %v582_v39 = vld [vmem:[#allocation11] sm:$0xff]  ;;  %v583_v40 = vld [vmem:[#allocation11 + $0x8] sm:$0xff] }
  0x9a   :  { %870 = vmatpush1.bf16.msra.mxu0 %v869_v44  ;;  %v475_v44 = vld [vmem:[#allocation10 + $0x18] sm:$0xff] }
  0x9b   :  { %872 = vmatprep.subr.bf16.mxu0 %v871_v45  ;;  %v492_v45 = vld [vmem:[#allocation10 + $0xa0] sm:$0xff]  ;;  %v909_v47 = vpack.c.bf16 %v475_v44, %v474_v43  ;;  %v936_v43 = vpack.c.bf16 %v583_v40, %v582_v39 }
  0x9c   :  { %v911_v48 = vpack.c.bf16 %v493_v46, %v492_v45  ;;  %v584_v45 = vld [vmem:[#allocation11 + $0x10] sm:$0xff]  ;;  %v585_v46 = vld [vmem:[#allocation11 + $0x18] sm:$0xff] }
  0x9e   :  { %874 = vmatpush1.bf16.msra.mxu0 %v873_v50  ;;  %v477_v50 = vld [vmem:[#allocation10 + $0x28] sm:$0xff] }
  0x9f   :  { %876 = vmatprep.subr.bf16.mxu0 %v875_v51  ;;  %v494_v51 = vld [vmem:[#allocation10 + $0xb0] sm:$0xff]  ;;  %v913_v53 = vpack.c.bf16 %v477_v50, %v476_v49  ;;  %v587_v49 = vld [vmem:[#allocation11 + $0x28] sm:$0xff] }
  0xa0   :  { %v915_v54 = vpack.c.bf16 %v495_v52, %v494_v51  ;;  %v588_v51 = vld [vmem:[#allocation11 + $0x30] sm:$0xff]  ;;  %v589_v52 = vld [vmem:[#allocation11 + $0x38] sm:$0xff] }
  0xa2   :  { %878 = vmatpush1.bf16.msra.mxu0 %v877_v56  ;;  %v479_v56 = vld [vmem:[#allocation10 + $0x38] sm:$0xff] }
  0xa3   :  { %880 = vmatprep.subr.bf16.mxu0 %v879_v57  ;;  %v496_v57 = vld [vmem:[#allocation10 + $0xc0] sm:$0xff]  ;;  %v917_v59 = vpack.c.bf16 %v479_v56, %v478_v55  ;;  %v591_v55 = vld [vmem:[#allocation11 + $0x48] sm:$0xff] }
  0xa4   :  { %v919_v60 = vpack.c.bf16 %v497_v58, %v496_v57  ;;  %v593_v57 = vld [vmem:[#allocation11 + $0x58] sm:$0xff] }
  0xa6   :  { %882 = vmatpush1.bf16.msra.mxu0 %v881_v62  ;;  %v481_v62 = vld [vmem:[#allocation10 + $0x48] sm:$0xff] }
  0xa7   :  { %884 = vmatprep.subr.bf16.mxu0 %v883_v63  ;;  %v498_v63 = vld [vmem:[#allocation10 + $0xd0] sm:$0xff]  ;;  %v921_v3 = vpack.c.bf16 %v481_v62, %v480_v61 }
  0xa8   :  { %v923_v4 = vpack.c.bf16 %v499_v2, %v498_v63  ;;  %v596_v62 = vld [vmem:[#allocation11 + $0x70] sm:$0xff]  ;;  %v597_v63 = vld [vmem:[#allocation11 + $0x78] sm:$0xff] }
  0xa9   :  { %v957_v2 = vpack.c.bf16 %v597_v63, %v596_v62 }
  0xaa   :  { %886 = vmatpush1.bf16.msra.mxu0 %v885_v6  ;;  %v483_v6 = vld [vmem:[#allocation10 + $0x58] sm:$0xff] }
  0xab   :  { %888 = vmatprep.subr.bf16.mxu0 %v887_v7  ;;  %v500_v7 = vld [vmem:[#allocation10 + $0xe0] sm:$0xff]  ;;  %v925_v9 = vpack.c.bf16 %v483_v6, %v482_v5 }
  0xac   :  { %v927_v10 = vpack.c.bf16 %v501_v8, %v500_v7 }
  0xae   :  { %890 = vmatpush1.bf16.msra.mxu0 %v889_v12  ;;  %v241_v12 = vshrl.u32 %v240_v11, 7 }
  0xaf   :  { %892 = vmatprep.subr.bf16.mxu0 %v891_v13 }
  0xb0   :  { %v242_v13 = vsub.s32 0, %v241_v12  ;;  %v246_v15 = vsub.s32 1, %v241_v12 }
  0xb2   :  { %894 = vmatpush1.bf16.msra.mxu0 %v893_v18  ;;  %v243_v16 = vrot.slane %v238_v14, %v242_v13  ;;  %v247_v17 = vrot.slane %v238_v14, %v246_v15 }
  0xb3   :  { %896 = vmatprep.subr.bf16.mxu0 %v895_v19 }
  0xb6   :  { %898 = vmatpush1.bf16.msra.mxu0 %v897_v27  ;;  %v502_v27 = vld [vmem:[#allocation10 + $0xf0] sm:$0xff] }
  0xb7   :  { %900 = vmatprep.subr.bf16.mxu0 %v899_v30  ;;  %v931_v29 = vpack.c.bf16 %v503_v28, %v502_v27  ;;  %v486_v30 = vld [vmem:[#allocation10 + $0x70] sm:$0xff] }
  0xb8   :  { %v933_v32 = vpack.c.bf16 %v487_v31, %v486_v30 }
  0xba   :  { %902 = vmatpush1.bf16.msra.mxu0 %v901_v33  ;;  %v387_v33 = vld [vmem:[%s1346_s6] sm:$0x3] }
  0xbb   :  { %v392_v34 = vrot.slane %v387_v33, %v242_v13  ;;  %v396_v35 = vrot.slane %v387_v33, %v246_v15 }
 0x14b   :  { %v201_v21 = vpop.f32.mrb[0].mxu0 }
 0x14c   :  { %v202_v22 = vadd.f32 %v694_v20, %v201_v21  ;;  %v765_v23 = vpop.f32.mrb[1].mxu0 }
 0x14e   :  { %v205_v24 = vmax.f32 %v202_v22, 0.0 }
 0x150   :  { %315 = vmatmul.mubr.f32.vlgmr.msra.gmra.mrb[0].mxu1 %v205_v24  ;;  %v484_v24 = vld [vmem:[#allocation10 + $0x60] sm:$0xff] }
 0x151   :  { %906 = vmatpush3.bf16.msra.mxu1 %v905_v41  ;;  %v929_v26 = vpack.c.bf16 %v485_v25, %v484_v24 }
 0x152   :  { %908 = vmatprep.subr.bf16.mxu1 %v907_v42 }
 0x155   :  { %910 = vmatpush3.bf16.msra.mxu1 %v909_v47  ;;  %v939_v47 = vpack.c.bf16 %v585_v46, %v584_v45 }
 0x156   :  { %912 = vmatprep.subr.bf16.mxu1 %v911_v48  ;;  %v586_v48 = vld [vmem:[#allocation11 + $0x20] sm:$0xff] }
 0x157   :  { %v942_v50 = vpack.c.bf16 %v587_v49, %v586_v48 }
 0x159   :  { %914 = vmatpush3.bf16.msra.mxu1 %v913_v53  ;;  %v945_v53 = vpack.c.bf16 %v589_v52, %v588_v51 }
 0x15a   :  { %916 = vmatprep.subr.bf16.mxu1 %v915_v54  ;;  %v590_v54 = vld [vmem:[#allocation11 + $0x40] sm:$0xff] }
 0x15b   :  { %v948_v56 = vpack.c.bf16 %v591_v55, %v590_v54 }
 0x15d   :  { %918 = vmatpush3.bf16.msra.mxu1 %v917_v59  ;;  %v594_v59 = vld [vmem:[#allocation11 + $0x60] sm:$0xff] }
 0x15e   :  { %920 = vmatprep.subr.bf16.mxu1 %v919_v60  ;;  %v595_v60 = vld [vmem:[#allocation11 + $0x68] sm:$0xff] }
 0x15f   :  { %v954_v61 = vpack.c.bf16 %v595_v60, %v594_v59 }
 0x161   :  { %922 = vmatpush3.bf16.msra.mxu1 %v921_v3 }
 0x162   :  { %924 = vmatprep.subr.bf16.mxu1 %v923_v4  ;;  %v696_v4 = vld [vmem:[%s1348_s8] ss:$0 sm:$0xff] }
 0x165   :  { %926 = vmatpush3.bf16.msra.mxu1 %v925_v9  ;;  %v697_v9 = vld [vmem:[%s1350_s10] ss:$0 sm:$0xff] }
 0x166   :  { %928 = vmatprep.subr.bf16.mxu1 %v927_v10 }
 0x169   :  { %930 = vmatpush3.bf16.msra.mxu1 %v929_v26 }
 0x16a   :  { %932 = vmatprep.subr.bf16.mxu1 %v931_v29 }
 0x16d   :  { %934 = vmatpush3.bf16.msra.mxu1 %v933_v32 }
 0x16e   :  { %935 = vmatprep.subr.bf16.mxu1 %v1147_v0 }
 0x223   :  { %v316_v18 = vpop.f32.mrb[0].mxu1 }
 0x224   :  { %v317_v19 = vadd.f32 %v316_v18, %v243_v16  ;;  %v318_v20 = vpop.f32.mrb[1].mxu1 }
 0x225   :  { %v319_v21 = vadd.f32 %v318_v20, %v247_v17 }
 0x226   :  { %v321_v23 = vmax.f32 %v317_v19, 0.0 }
 0x227   :  { %v322_v22 = vmax.f32 %v319_v21, 0.0 }
 0x229   :  { %463 = vmatprep.mubr.f32.mxu0 %v322_v22 }
 0x22a   :  { %464 = vmatmul.mubr.f32.vlgmr.msra.gmra.mrb[2].mxu0 %v321_v23 }
 0x2fd   :  { %v465_v36 = vpop.f32.mrb[2].mxu0 }
 0x2fe   :  { %v466_v37 = vadd.f32 %v465_v36, %v392_v34  ;;  %v467_v38 = vpop.f32.mrb[3].mxu0 }
 0x2ff   :  { %v468_v41 = vadd.f32 %v467_v38, %v396_v35 }
 0x300   :  { %v470_v44 = vmax.f32 %v466_v37, 0.0 }
 0x301   :  { %v471_v42 = vmax.f32 %v468_v41, 0.0 }
 0x303   :  { %575 = vmatprep.mubr.f32.mxu1 %v471_v42 }
 0x304   :  { %576 = vmatmul.mubr.f32.vlgmr.msra.gmra.mrb[2].mxu1 %v470_v44 }
 0x305   :  { %937 = vmatpush3.bf16.msra.mxu1 %v936_v43  ;;  %798 = vmatprep.mubr.msk.f32.mxu1 %vm1148_vm0, %v1149_v1  ;;  %v592_v1 = vld [vmem:[#allocation11 + $0x50] sm:$0xff] }
 0x306   :  { %938 = vmatprep.subr.bf16.mxu1 %v1147_v0  ;;  %v951_v58 = vpack.c.bf16 %v593_v57, %v592_v1 }
 0x309   :  { %940 = vmatpush3.bf16.msra.mxu1 %v939_v47 }
 0x30a   :  { %941 = vmatprep.subr.bf16.mxu1 %v1147_v0 }
 0x30d   :  { %943 = vmatpush3.bf16.msra.mxu1 %v942_v50 }
 0x30e   :  { %944 = vmatprep.subr.bf16.mxu1 %v1147_v0 }
 0x311   :  { %946 = vmatpush3.bf16.msra.mxu1 %v945_v53 }
 0x312   :  { %947 = vmatprep.subr.bf16.mxu1 %v1147_v0 }
 0x315   :  { %949 = vmatpush3.bf16.msra.mxu1 %v948_v56 }
 0x316   :  { %950 = vmatprep.subr.bf16.mxu1 %v1147_v0 }
 0x319   :  { %952 = vmatpush3.bf16.msra.mxu1 %v951_v58 }
 0x31a   :  { %953 = vmatprep.subr.bf16.mxu1 %v1147_v0 }
 0x31d   :  { %955 = vmatpush3.bf16.msra.mxu1 %v954_v61 }
 0x31e   :  { %956 = vmatprep.subr.bf16.mxu1 %v1147_v0 }
 0x321   :  { %958 = vmatpush3.bf16.msra.mxu1 %v957_v2 }
 0x3d7   :  { %v735_v3 = vpop.f32.mrb[2].mxu1 }
 0x3d8   :  { %v736_v5 = vpop.f32.mrb[3].mxu1 }
 0x3d9   :  { %v737_v6 = vadd.f32 %v736_v5, %v735_v3 }
 0x3db   :  { %v578_v7 = vadd.f32 %v737_v6, %v696_v4 }
 0x3dd   :  { %v581_v8 = vmax.f32 %v578_v7, 0.0 }
 0x3df   :  { %799 = vmatmul.mubr.f32.vlgmr.msra.gmra.mrb[4].mxu1 %v581_v8 }
 0x4b2   :  { %v671_v0 = vpop.f32.mrb[4].mxu1 }
 0x4b3   :  { %v672_v10 = vadd.f32 %v697_v9, %v671_v0  ;;  %v800_v11 = vpop.f32.mrb[5].mxu1 }
 0x4b5   :  { %675 = vst [vmem:[#allocation13] sm:$0xff] %v672_v10 }
 0x4b6   :  { %1116 = shalt.err (!%p1113_p10)
}
 0x4b7   :  { %s1117_s3 = scalar_lea.hbm %s1351_s11, 128 }
 0x4b8   :  { %p1118_p11 = scmp.ne.s32.totalorder %s1351_s11, %s1117_s3  ;;  %p1121_p12 = scmp.lt.u32.totalorder %s1117_s3, %s1351_s11 }
 0x4ba   :  { %p1123_p13 = pnand %p1121_p12, %p1118_p11 }
 0x4bc   :  { %1126 = shalt.err (!%p1123_p13)
}
 0x4bd   :  { %685 = dma.vmem_to_hbm [thread:$0]  %s683_s23, 128, %s1351_s11, [#allocation4]  }
 0x4be   :  { %1135 = dma.done.wait [#allocation4], 128  }
 0x4bf   :  { %1136 = vsyncadd [#allocation4], 4294967168 }
 0x4c0   :  { %689 = vsyncpa [#allocation3], 1 }
 0x4c1   :  { %690 = vsyncpa [#allocation6], 1 }
 0x4c2   :  { %691 = vsyncpa [#allocation9], 1 }
 0x4c3   :  { %692 = vsyncpa [#allocation12], 1 }
 0x4c4   :  { %693 = vsyncpa [#allocation4], 1 }

</bundles_post_ra>
